<compile_context>
chip_gen: v7x
topology: tpu7x:2x2x1
jax: 0.10.0
libtpu: 0.0.40
codegen_flags: <defaults>
</compile_context>

<pallas_src>
import jax
import jax.numpy as jnp
from jax.experimental import pallas as pl
from jax.experimental.pallas import tpu as pltpu


def _round_up(x: int, m: int) -> int:
    return ((x + m - 1) // m) * m


def _round_down(x: int, m: int) -> int:
    return (x // m) * m


def quantile_loss(y_pred, y_true, quantiles, *, tile_n=262144):
    """Pallas equivalent of QuantileLoss.forward.

    y_pred: (B, S, Q)   y_true: (B, S)   quantiles: static length-Q sequence
    Returns a float32 scalar == mean over the (B, S, Q) pinball losses.
    """
    B, S, Q = y_pred.shape
    assert y_true.shape == (B, S)
    assert len(quantiles) == Q
    n = B * S
    qs = tuple(float(q) for q in quantiles)   # compile-time constants

    # Lane-dense, quantile-major views. With allow_input_fusion the transpose/
    # reshape can fuse into the pallas_call input DMA (no extra HBM pass).
    yp = jnp.transpose(y_pred, (2, 0, 1)).reshape(Q, n)
    yt = jnp.reshape(y_true, (1, n))

    # ---- tile selection ----------------------------------------------------
    lane_bytes = Q * y_pred.dtype.itemsize + y_true.dtype.itemsize
    vmem_budget = 12 * 1024 * 1024            # double-buffered input budget
    max_tn = max(128, _round_down(vmem_budget // (2 * lane_bytes), 128))
    tn = min(int(tile_n), max_tn, _round_up(n, 128))
    tn = max(128, _round_up(tn, 128))
    # If one tile covers everything but the input is non-trivial, split in two
    # so the "parallel" grid axis can shard across v7x's two TensorCores.
    if tn >= n and n > 2 * 128:
        tn = max(128, _round_up(-(-n // 2), 128))
    num_tiles = -(-n // tn)                   # cdiv; last block may be ragged

    def kernel(yt_ref, yp_ref, out_ref):
        i = pl.program_id(0)
        yt_blk = yt_ref[...].astype(jnp.float32)            # (1, tn)
        total = jnp.zeros_like(yt_blk)                       # (1, tn) f32
        for qi, q in enumerate(qs):                          # unrolled, scalars
            err = yt_blk - yp_ref[pl.ds(qi, 1), :].astype(jnp.float32)
            total = total + jnp.maximum(q * err, (q - 1.0) * err)
        if n % tn != 0:
            # Mask the ragged tail of the last block (OOB data is unspecified).
            rem = n - i * tn
            lane = jax.lax.broadcasted_iota(jnp.int32, total.shape, 1)
            total = jnp.where(lane < rem, total, 0.0)
        # Lane-dense unmasked store of this tile's partial sum.
        out_ref[...] = jnp.full(out_ref.shape, jnp.sum(total), dtype=jnp.float32)

    cost = pl.CostEstimate(
        flops=5 * Q * n,
        transcendentals=0,
        bytes_accessed=(Q * n * y_pred.dtype.itemsize
                        + n * y_true.dtype.itemsize
                        + num_tiles * 128 * 4),
    )

    partials = pl.pallas_call(
        kernel,
        out_shape=jax.ShapeDtypeStruct((1, num_tiles * 128), jnp.float32),
        grid=(num_tiles,),
        in_specs=[
            pl.BlockSpec((1, tn), lambda i: (0, i)),   # y_true tile
            pl.BlockSpec((Q, tn), lambda i: (0, i)),   # y_pred tile (q-major)
        ],
        out_specs=pl.BlockSpec((1, 128), lambda i: (0, i)),
        compiler_params=pltpu.CompilerParams(
            dimension_semantics=("parallel",),
            allow_input_fusion=[True, True],
        ),
        cost_estimate=cost,
    )(yt, yp)

    # Each tile's scalar partial sum lives in lane 0 of its 128-lane stripe.
    per_tile = partials.reshape(num_tiles, 128)[:, 0]
    # Divisor is the GLOBAL element count (torch.mean over (B, S, Q)).
    return jnp.sum(per_tile) / jnp.float32(n * Q)


def _reference_quantile_loss(y_pred, y_true, quantiles):
    q = jnp.asarray(quantiles, dtype=jnp.float32)[None, None, :]
    err = y_true[:, :, None].astype(jnp.float32) - y_pred.astype(jnp.float32)
    return jnp.mean(jnp.maximum(q * err, (q - 1.0) * err))


if __name__ == "__main__":
    # Module "parameters": the quantile list (static / compile-time).
    quantiles = (0.1, 0.5, 0.9)

    B, S, Q = 2, 8, len(quantiles)
    key = jax.random.PRNGKey(0)
    k1, k2 = jax.random.split(key)
    y_pred = jax.random.normal(k1, (B, S, Q), dtype=jnp.float32)
    y_true = jax.random.normal(k2, (B, S), dtype=jnp.float32)

    loss_fn = jax.jit(quantile_loss, static_argnames=("quantiles", "tile_n"))

    loss = jax.block_until_ready(loss_fn(y_pred, y_true, quantiles=quantiles))
    ref = _reference_quantile_loss(y_pred, y_true, quantiles)
    assert jnp.allclose(loss, ref, rtol=1e-5, atol=1e-6), (loss, ref)

    # Exercise the multi-tile grid + in-kernel ragged-tail masking path.
    B2, S2 = 4, 300
    k3, k4 = jax.random.split(k2)
    y_pred2 = jax.random.normal(k3, (B2, S2, Q), dtype=jnp.float32)
    y_true2 = jax.random.normal(k4, (B2, S2), dtype=jnp.float32)
    loss2 = jax.block_until_ready(
        loss_fn(y_pred2, y_true2, quantiles=quantiles, tile_n=512))
    ref2 = _reference_quantile_loss(y_pred2, y_true2, quantiles)
    assert jnp.allclose(loss2, ref2, rtol=1e-5, atol=1e-6), (loss2, ref2)

    print("KERNEL_OK")
</pallas_src>

<mosaic_0001>
module attributes {stable_mosaic.version = 11 : i64} {
  func.func @kernel(%arg0: i32, %arg1: memref<1x128xf32, #tpu.memory_space<vmem>>, %arg2: memref<3x128xf32, #tpu.memory_space<vmem>>, %arg3: memref<1x128xf32, #tpu.memory_space<vmem>>) attributes {dimension_semantics = [#tpu.dimension_semantics<parallel>], iteration_bounds = array<i64: 1>, scalar_prefetch = 0 : i64, scratch_operands = 0 : i64, tpu.core_type = #tpu.core_type<tc>, window_params = [{transform_indices = @transform_0, window_bounds = array<i64: 1, 128>}, {transform_indices = @transform_1, window_bounds = array<i64: 3, 128>}, {transform_indices = @transform_2, window_bounds = array<i64: 1, 128>}]} {
    %c0 = arith.constant 0 : index
    %c0_0 = arith.constant 0 : index
    %0 = vector.load %arg1[%c0, %c0_0] : memref<1x128xf32, #tpu.memory_space<vmem>>, vector<1x128xf32>
    %cst = arith.constant 0.000000e+00 : f32
    %1 = vector.broadcast %cst : f32 to vector<1x128xf32>
    %c0_1 = arith.constant 0 : index
    %c0_2 = arith.constant 0 : index
    %2 = vector.load %arg2[%c0_1, %c0_2] : memref<3x128xf32, #tpu.memory_space<vmem>>, vector<1x128xf32>
    %3 = arith.subf %0, %2 : vector<1x128xf32>
    %cst_3 = arith.constant 1.000000e-01 : f32
    %4 = vector.broadcast %cst_3 : f32 to vector<1x128xf32>
    %5 = arith.mulf %4, %3 : vector<1x128xf32>
    %cst_4 = arith.constant -0.899999976 : f32
    %6 = vector.broadcast %cst_4 : f32 to vector<1x128xf32>
    %7 = arith.mulf %6, %3 : vector<1x128xf32>
    %8 = arith.maximumf %5, %7 : vector<1x128xf32>
    %9 = arith.addf %1, %8 : vector<1x128xf32>
    %c1 = arith.constant 1 : index
    %c0_5 = arith.constant 0 : index
    %10 = vector.load %arg2[%c1, %c0_5] : memref<3x128xf32, #tpu.memory_space<vmem>>, vector<1x128xf32>
    %11 = arith.subf %0, %10 : vector<1x128xf32>
    %cst_6 = arith.constant 5.000000e-01 : f32
    %12 = vector.broadcast %cst_6 : f32 to vector<1x128xf32>
    %13 = arith.mulf %12, %11 : vector<1x128xf32>
    %cst_7 = arith.constant -5.000000e-01 : f32
    %14 = vector.broadcast %cst_7 : f32 to vector<1x128xf32>
    %15 = arith.mulf %14, %11 : vector<1x128xf32>
    %16 = arith.maximumf %13, %15 : vector<1x128xf32>
    %17 = arith.addf %9, %16 : vector<1x128xf32>
    %c2 = arith.constant 2 : index
    %c0_8 = arith.constant 0 : index
    %18 = vector.load %arg2[%c2, %c0_8] : memref<3x128xf32, #tpu.memory_space<vmem>>, vector<1x128xf32>
    %19 = arith.subf %0, %18 : vector<1x128xf32>
    %cst_9 = arith.constant 0.899999976 : f32
    %20 = vector.broadcast %cst_9 : f32 to vector<1x128xf32>
    %21 = arith.mulf %20, %19 : vector<1x128xf32>
    %cst_10 = arith.constant -1.000000e-01 : f32
    %22 = vector.broadcast %cst_10 : f32 to vector<1x128xf32>
    %23 = arith.mulf %22, %19 : vector<1x128xf32>
    %24 = arith.maximumf %21, %23 : vector<1x128xf32>
    %25 = arith.addf %17, %24 : vector<1x128xf32>
    %c128_i32 = arith.constant 128 : i32
    %26 = arith.muli %arg0, %c128_i32 : i32
    %c16_i32 = arith.constant 16 : i32
    %27 = arith.subi %c16_i32, %26 : i32
    %28 = tpu.iota {dimensions = array<i32: 1>} : vector<1x128xi32>
    %29 = vector.broadcast %27 : i32 to vector<1x128xi32>
    %30 = arith.cmpi slt, %28, %29 : vector<1x128xi32>
    %cst_11 = arith.constant 0.000000e+00 : f32
    %31 = vector.broadcast %cst_11 : f32 to vector<1x128xf32>
    %32 = arith.select %30, %25, %31 : vector<1x128xi1>, vector<1x128xf32>
    %33 = vector.shape_cast %32 : vector<1x128xf32> to vector<1x1x128xf32>
    %cst_12 = arith.constant dense<0.000000e+00> : vector<1xf32>
    %34 = vector.multi_reduction <add>, %33, %cst_12 [1, 2] : vector<1x1x128xf32> to vector<1xf32>
    %35 = vector.shape_cast %34 : vector<1xf32> to vector<1x1x1xf32>
    %36 = vector.extract %35[0, 0, 0] : f32 from vector<1x1x1xf32>
    %37 = vector.broadcast %36 : f32 to vector<1x128xf32>
    %c0_13 = arith.constant 0 : index
    %c0_14 = arith.constant 0 : index
    %38 = vector.load %arg3[%c0_13, %c0_14] : memref<1x128xf32, #tpu.memory_space<vmem>>, vector<1x128xf32>
    tpu.vector_store %arg3[%c0_13, %c0_14], %37 {strides = array<i32>} : memref<1x128xf32, #tpu.memory_space<vmem>>, vector<1x128xf32>,
    return
  }
  func.func @transform_0(%arg0: i32) -> (i32, i32) {
    %c0_i32 = arith.constant 0 : i32
    %c0_i32_0 = arith.constant 0 : i32
    return %c0_i32, %arg0 : i32, i32
  }
  func.func @transform_1(%arg0: i32) -> (i32, i32) {
    %c0_i32 = arith.constant 0 : i32
    %c0_i32_0 = arith.constant 0 : i32
    return %c0_i32, %arg0 : i32, i32
  }
  func.func @transform_2(%arg0: i32) -> (i32, i32) {
    %c0_i32 = arith.constant 0 : i32
    %c0_i32_0 = arith.constant 0 : i32
    return %c0_i32, %arg0 : i32, i32
  }
}

</mosaic_0001>

<bundles_post_ra>
// kernel: quantile_loss.1
= control target key start
LH: loop header
LB: loop body
LE: loop exit
PB: predicated region body
PF: predicated region fallthrough
CT: control target
= control target key end

     0   :  { %v32_v3 = vlaneseq  ;;  %vm37_vm1 = vcmask 1040384   ;;  %s86_s0 = inlined_call_operand.vmem [shape: f32[1,16], index: 0, kind: input, shape index: {}]   ;;  %s87_s1 = inlined_call_operand.vmem [shape: f32[3,16], index: 1, kind: input, shape index: {}]   ;;  %s88_s2 = inlined_call_operand.vmem [shape: f32[1,128], index: 2, kind: output, shape index: {}]  }
   0x1   :  { %v11_v0 = vld [vmem:[%s86_s0] sm:$0x1]  ;;  %v18_v2 = vld [vmem:[%s87_s1 + $0x1] sm:$0x1]  ;;  %v24_v6 = vld [vmem:[%s87_s1 + $0x2] sm:$0x1] }
   0x2   :  { %v12_v1 = vld [vmem:[%s87_s1] sm:$0x1]  ;;  %v19_v5 = vsub.f32 %v11_v0, %v18_v2  ;;  %v25_v7 = vsub.f32 %v11_v0, %v24_v6  ;;  %v33_v14 = vand.u32 127, %v32_v3 }
   0x3   :  { %v13_v4 = vsub.f32 %v11_v0, %v12_v1 }
   0x4   :  { %v20_v10 = vmul.f32 0.5, %v19_v5  ;;  %v21_v11 = vmul.f32 -0.5, %v19_v5  ;;  %v26_v12 = vmul.f32 0.9, %v25_v7  ;;  %v27_v13 = vmul.f32 -0.1, %v25_v7 }
   0x5   :  { %v14_v8 = vmul.f32 0.1, %v13_v4  ;;  %v15_v9 = vmul.f32 -0.9, %v13_v4  ;;  %vm35_vm0 = vcmp.lt.s32.totalorder %v33_v14, 16 }
   0x6   :  { %v22_v16 = vmax.f32 %v20_v10, %v21_v11  ;;  %v28_v17 = vmax.f32 %v26_v12, %v27_v13 }
   0x7   :  { %v16_v15 = vmax.f32 %v14_v8, %v15_v9 }
   0x9   :  { %v23_v18 = vadd.f32 %v22_v16, %v16_v15 }
   0xb   :  { %v29_v19 = vadd.f32 %v28_v17, %v23_v18 }
   0xd   :  { %v36_v20 = vsel %vm35_vm0, %v29_v19, 0.0 }
   0xe   :  { %v38_v21 = vsel %vm37_vm1, %v36_v20, 0.0 }
   0xf   :  { %39 = vadd.xlane.f32.xlu0 %v38_v21 }
  0x9c   :  { %v40_v22 = vpop.xlane.xlu0 %39 }
  0x9d   :  { %v41_v23 = vrot.slane %v40_v22, 4 }
  0x9f   :  { %v42_v24 = vadd.f32 %v41_v23, %v40_v22 }
  0xa1   :  { %v43_v25 = vrot.slane %v42_v24, 2 }
  0xa3   :  { %v44_v26 = vadd.f32 %v43_v25, %v42_v24 }
  0xa5   :  { %v45_v27 = vrot.slane %v44_v26, 1 }
  0xa7   :  { %v46_v28 = vadd.f32 %v45_v27, %v44_v26 }
  0xa9   :  { %54 = vpush %v46_v28 }
  0xda   :  { %s55_s0 = spop %54 }
  0xdb   :  { %v48_v29 = vstv %s55_s0 }
  0xdc   :  { %49 = vst [vmem:[%s88_s2] sm:$0x1] %v48_v29 }

</bundles_post_ra>
